<compile_context>
chip_gen: v7x
topology: tpu7x:2x2x1
jax: 0.10.0
libtpu: 0.0.40
codegen_flags: <defaults>
</compile_context>

<pallas_src>
import jax
import jax.numpy as jnp
from jax import lax
from jax.experimental import pallas as pl
from jax.experimental.pallas import tpu as pltpu

_LANE = 128
_SUBLANE_BF16 = 16          # keep bf16 activation tiles packed-sublane aligned
_TM_MAX = 512
_TN_MAX = 1024
_VMEM_TILE_BUDGET = 36 * 1024 * 1024   # double-buffered tile working set cap


def _round_up(x, m):
    return ((x + m - 1) // m) * m


def _vmem_footprint(tm, tn, tk, k_steps, out_bytes):
    x_bytes = 2 * tm * tk * 2          # bf16 activations, double-buffered
    w_bytes = 2 * tk * tn * 1          # int8 weights, double-buffered
    o_bytes = 2 * tm * tn * out_bytes  # output tiles, double-buffered
    acc_bytes = tm * tn * 4 if k_steps > 1 else 0
    return x_bytes + w_bytes + o_bytes + acc_bytes


def _choose_tiles(M, N, K, out_bytes):
    """Pick (tm, tn, tk).  Prefers whole-K (single reduction step) when it fits
    the VMEM budget; otherwise the largest aligned tk that does.  TODO(synk):
    sweep tn/tk per shape/generation for the last few percent."""
    tm = min(_TM_MAX, _round_up(M, _SUBLANE_BF16))
    tn = min(_TN_MAX, _round_up(N, _LANE))
    k_aligned = _round_up(K, _LANE)
    for tk in (k_aligned, 4096, 2048, 1024, 512, 256, _LANE):
        if tk > k_aligned:
            continue
        kp = _round_up(K, tk)
        k_steps = kp // tk
        if _vmem_footprint(tm, tn, tk, k_steps, out_bytes) <= _VMEM_TILE_BUDGET:
            return tm, tn, tk
    return tm, tn, _LANE


def prepare_weight(w_int8, *, tn, tk):
    """One-time weight prep (hoist out of the per-call path; weights are static):
    (N, K) int8 -> (Kp, Np) int8, K-major so the MXU rhs has N on lanes."""
    N, K = w_int8.shape
    Np, Kp = _round_up(N, tn), _round_up(K, tk)
    w_kn = jnp.transpose(w_int8)                       # (K, N)
    if (Kp, Np) != (K, N):
        w_kn = jnp.pad(w_kn, ((0, Kp - K), (0, Np - N)))
    return w_kn


# ----------------------------- kernels ------------------------------------- #

def _qlinear_kernel_single_k(scale_ref, x_ref, w_ref, o_ref):
    # Whole-K path: no accumulator, no reduction grid axis.
    part = lax.dot_general(
        x_ref[...],                                   # bf16 (tm, tk)
        w_ref[...].astype(jnp.bfloat16),              # int8 -> bf16 (exact)
        dimension_numbers=(((1,), (0,)), ((), ())),   # (M,K) x (K,N)
        preferred_element_type=jnp.float32,
    )
    o_ref[...] = (scale_ref[0] * part).astype(o_ref.dtype)


def _make_qlinear_kernel(k_steps):
    def kernel(scale_ref, x_ref, w_ref, o_ref, acc_ref):
        k = pl.program_id(2)
        part = lax.dot_general(
            x_ref[...],
            w_ref[...].astype(jnp.bfloat16),
            dimension_numbers=(((1,), (0,)), ((), ())),
            preferred_element_type=jnp.float32,
        )

        @pl.when(k == 0)
        def _():
            acc_ref[...] = part                       # no separate zero-init

        @pl.when(jnp.logical_and(k > 0, k < k_steps - 1))
        def _():
            acc_ref[...] += part

        @pl.when(k == k_steps - 1)
        def _():
            # Fold last partial + scale straight into the output store.
            o_ref[...] = (scale_ref[0] * (acc_ref[...] + part)).astype(o_ref.dtype)

    return kernel


# ----------------------------- wrappers ------------------------------------ #

def quantized_linear_prepared(x, w_kn, scale, n_out, *, tm, tn, tk):
    """x: (..., K) float; w_kn: (Kp, Np) int8 from prepare_weight; scale: (1,)."""
    *lead, K = x.shape
    Kp, Np = w_kn.shape
    assert Kp == _round_up(K, tk) and Np % tn == 0

    x2 = x.reshape(-1, K).astype(jnp.bfloat16)        # bf16 activations in HBM
    M = x2.shape[0]
    Mp = _round_up(M, tm)
    if (Mp, Kp) != (M, K):
        x2 = jnp.pad(x2, ((0, Mp - M), (0, Kp - K)))

    scale_arr = jnp.asarray(scale, dtype=jnp.float32).reshape((1,))
    out_dtype = x.dtype
    out_bytes = jnp.dtype(out_dtype).itemsize

    m_blocks, n_blocks, k_steps = Mp // tm, Np // tn, Kp // tk

    footprint = _vmem_footprint(tm, tn, tk, k_steps, out_bytes)
    vmem_limit = int(min(max(int(footprint * 1.5) + (8 << 20), 32 << 20), 56 << 20))

    if k_steps == 1:
        kernel = _qlinear_kernel_single_k
        grid = (n_blocks, m_blocks)                   # N leads -> megacore split
        in_specs = [
            pl.BlockSpec(memory_space=pltpu.MemorySpace.SMEM),         # scale
            pl.BlockSpec((tm, tk), lambda j, i: (i, 0)),               # x
            pl.BlockSpec((tk, tn), lambda j, i: (0, j)),               # int8 w
        ]
        out_specs = pl.BlockSpec((tm, tn), lambda j, i: (i, j))
        scratch_shapes = []
        dims = ("parallel", "parallel")
    else:
        kernel = _make_qlinear_kernel(k_steps)
        grid = (n_blocks, m_blocks, k_steps)          # reduction innermost
        in_specs = [
            pl.BlockSpec(memory_space=pltpu.MemorySpace.SMEM),
            pl.BlockSpec((tm, tk), lambda j, i, k: (i, k)),
            pl.BlockSpec((tk, tn), lambda j, i, k: (k, j)),
        ]
        out_specs = pl.BlockSpec((tm, tn), lambda j, i, k: (i, j))
        scratch_shapes = [pltpu.VMEM((tm, tn), jnp.float32)]
        dims = ("parallel", "parallel", "arbitrary")

    out = pl.pallas_call(
        kernel,
        out_shape=jax.ShapeDtypeStruct((Mp, Np), out_dtype),
        grid=grid,
        in_specs=in_specs,
        out_specs=out_specs,
        scratch_shapes=scratch_shapes,
        compiler_params=pltpu.CompilerParams(
            dimension_semantics=dims,
            vmem_limit_bytes=vmem_limit,
        ),
    )(scale_arr, x2, w_kn)

    return out[:M, :n_out].reshape(*lead, n_out)


def quantized_cpu_linear(x, w_int8, scale, *, tm=None, tn=None, tk=None):
    """One-shot forward matching QuantizedCpuLinear.forward.  For repeated calls,
    use prepare_weight() once and quantized_linear_prepared() per call."""
    N, K = w_int8.shape
    M = 1
    for d in x.shape[:-1]:
        M *= d
    tm_d, tn_d, tk_d = _choose_tiles(M, N, K, jnp.dtype(x.dtype).itemsize)
    tm, tn, tk = tm or tm_d, tn or tn_d, tk or tk_d
    w_kn = prepare_weight(w_int8, tn=tn, tk=tk)
    return quantized_linear_prepared(x, w_kn, scale, N, tm=tm, tn=tn, tk=tk)


# ------------------------------- demo / test -------------------------------- #

if __name__ == "__main__":
    key = jax.random.PRNGKey(0)
    kx, kw, kx2, kw2 = jax.random.split(key, 4)

    # Test 1: module-sized shapes (single-K-step fast path), prepared-weight API.
    batch, seq = 2, 8
    in_features, out_features = 32, 64
    x = jax.random.normal(kx, (batch, seq, in_features), dtype=jnp.float32)
    w_int8 = jax.random.randint(
        kw, (out_features, in_features), minval=-128, maxval=128, dtype=jnp.int32
    ).astype(jnp.int8)
    scale = jnp.array([0.02], dtype=jnp.float32)

    M = batch * seq
    tm, tn, tk = _choose_tiles(M, out_features, in_features, 4)
    w_kn = prepare_weight(w_int8, tn=tn, tk=tk)       # hoisted, one-time prep
    y = quantized_linear_prepared(x, w_kn, scale, out_features, tm=tm, tn=tn, tk=tk)
    jax.block_until_ready(y)
    assert y.shape == (batch, seq, out_features)

    # Reference 1: exact module semantics (f32 dequant then linear).
    w_deq = w_int8.astype(jnp.float32) * scale
    y_f32 = jnp.einsum("bsk,nk->bsn", x, w_deq)
    # Reference 2: numerics-matched (bf16 MXU inputs, f32 accumulate, scale last).
    y_bf16 = scale[0] * jnp.einsum(
        "bsk,nk->bsn",
        x.astype(jnp.bfloat16),
        w_int8.astype(jnp.bfloat16),
        preferred_element_type=jnp.float32,
    )
    assert jnp.allclose(y, y_bf16, atol=2e-3, rtol=2e-3), "mismatch vs bf16 reference"
    assert jnp.allclose(y, y_f32, atol=0.25, rtol=2e-2), "mismatch vs f32 reference"

    # Test 2: force the multi-K-step accumulator path (tk override -> 2 k-steps).
    in2, out2 = 256, 128
    x2 = jax.random.normal(kx2, (batch, seq, in2), dtype=jnp.float32)
    w2 = jax.random.randint(
        kw2, (out2, in2), minval=-128, maxval=128, dtype=jnp.int32
    ).astype(jnp.int8)
    y2 = quantized_cpu_linear(x2, w2, scale, tm=16, tn=128, tk=128)
    jax.block_until_ready(y2)
    y2_ref = scale[0] * jnp.einsum(
        "bsk,nk->bsn",
        x2.astype(jnp.bfloat16),
        w2.astype(jnp.bfloat16),
        preferred_element_type=jnp.float32,
    )
    assert y2.shape == (batch, seq, out2)
    assert jnp.allclose(y2, y2_ref, atol=5e-2, rtol=5e-3), "multi-k path mismatch"

    print("KERNEL_OK")
</pallas_src>

<mosaic_0001>
module attributes {stable_mosaic.version = 11 : i64} {
  func.func @_qlinear_kernel_single_k(%arg0: i32, %arg1: i32, %arg2: memref<1xf32, #tpu.memory_space<smem>>, %arg3: memref<16x128xbf16, #tpu.memory_space<vmem>>, %arg4: memref<128x128xi8, #tpu.memory_space<vmem>>, %arg5: memref<16x128xf32, #tpu.memory_space<vmem>>) attributes {dimension_semantics = [#tpu.dimension_semantics<parallel>, #tpu.dimension_semantics<parallel>], iteration_bounds = array<i64: 1, 1>, scalar_prefetch = 0 : i64, scratch_operands = 0 : i64, tpu.core_type = #tpu.core_type<tc>, window_params = [{transform_indices = @transform_0, window_bounds = array<i64: 1>}, {transform_indices = @transform_1, window_bounds = array<i64: 16, 128>}, {transform_indices = @transform_2, window_bounds = array<i64: 128, 128>}, {transform_indices = @transform_3, window_bounds = array<i64: 16, 128>}]} {
    %c0 = arith.constant 0 : index
    %c0_0 = arith.constant 0 : index
    %0 = vector.load %arg3[%c0, %c0_0] : memref<16x128xbf16, #tpu.memory_space<vmem>>, vector<16x128xbf16>
    %c0_1 = arith.constant 0 : index
    %c0_2 = arith.constant 0 : index
    %1 = vector.load %arg4[%c0_1, %c0_2] : memref<128x128xi8, #tpu.memory_space<vmem>>, vector<128x128xi8>
    %2 = arith.sitofp %1 : vector<128x128xi8> to vector<128x128xbf16>
    %cst = arith.constant dense<0.000000e+00> : vector<16x128xf32>
    %3 = tpu.matmul %0, %2, %cst {dimension_numbers = #tpu.dot_dimension_numbers<[1], [0], [0], [1], [0, 0, 1, 1], [], []>} : vector<16x128xbf16>, vector<128x128xbf16>, vector<16x128xf32> -> vector<16x128xf32>
    %c0_3 = arith.constant 0 : index
    %4 = memref.load %arg2[%c0_3] : memref<1xf32, #tpu.memory_space<smem>>
    %5 = vector.broadcast %4 : f32 to vector<16x128xf32>
    %6 = arith.mulf %5, %3 : vector<16x128xf32>
    %c0_4 = arith.constant 0 : index
    %c0_5 = arith.constant 0 : index
    %7 = vector.load %arg5[%c0_4, %c0_5] : memref<16x128xf32, #tpu.memory_space<vmem>>, vector<16x128xf32>
    tpu.vector_store %arg5[%c0_4, %c0_5], %6 {strides = array<i32>} : memref<16x128xf32, #tpu.memory_space<vmem>>, vector<16x128xf32>,
    return
  }
  func.func @transform_0(%arg0: i32, %arg1: i32) -> i32 {
    %c0_i32 = arith.constant 0 : i32
    %c0_i32_0 = arith.constant 0 : i32
    return %c0_i32 : i32
  }
  func.func @transform_1(%arg0: i32, %arg1: i32) -> (i32, i32) {
    %c0_i32 = arith.constant 0 : i32
    %c0_i32_0 = arith.constant 0 : i32
    return %arg1, %c0_i32 : i32, i32
  }
  func.func @transform_2(%arg0: i32, %arg1: i32) -> (i32, i32) {
    %c0_i32 = arith.constant 0 : i32
    %c0_i32_0 = arith.constant 0 : i32
    return %c0_i32, %arg0 : i32, i32
  }
  func.func @transform_3(%arg0: i32, %arg1: i32) -> (i32, i32) {
    %c0_i32 = arith.constant 0 : i32
    return %arg1, %arg0 : i32, i32
  }
}

</mosaic_0001>

<bundles_post_ra>
// kernel: tpu_custom_call.1
= control target key start
LH: loop header
LB: loop body
LE: loop exit
PB: predicated region body
PF: predicated region fallthrough
CT: control target
= control target key end

     0   :  { %9 = vsyncpa [#allocation4], 0  ;;  %s316_s0 = inlined_call_operand.<no memory space> [shape: f32[1], index: 0, kind: input, shape index: {}]   ;;  %s317_s1 = inlined_call_operand.hbm [shape: bf16[16,128], index: 1, kind: input, shape index: {}]   ;;  %s318_s2 = inlined_call_operand.hbm [shape: s8[128,128], index: 2, kind: input, shape index: {}]   ;;  %s319_s3 = inlined_call_operand.hbm [shape: f32[16,128], index: 3, kind: output, shape index: {}]  }
   0x1   :  { %10 = vsyncpa [#allocation7], 0 }
   0x2   :  { %11 = vsyncpa [#allocation5], 0  ;;  %s242_s12 = smov [#allocation3]   ;;  %s170_s16 = scalar_lea.hbm %s317_s1, 128 }
   0x3   :  { %s19_s13 = sshll.u32 %s242_s12, 4  ;;  %p171_p0 = scmp.ne.s32.totalorder %s317_s1, %s170_s16  ;;  %s20_s13 = int_to_ptr.vmem [resolvable:$true] %s19_s13 }
   0x4   :  { %p174_p1 = scmp.lt.u32.totalorder %s170_s16, %s317_s1 }
   0x6   :  { %p176_p2 = pnand %p174_p1, %p171_p0 }
   0x8   :  { %179 = shalt.err (!%p176_p2)
}
   0x9   :  { %s180_s21 = scalar_lea.vmem %s20_s13, 128  ;;  %p185_p4 = scmp.lt.s32.totalorder %s20_s13, %s20_s13 }
   0xa   :  { %p181_p3 = scmp.ne.s32.totalorder %s20_s13, %s180_s21  ;;  %p186_p5 = scmp.lt.s32.totalorder %s180_s21, %s180_s21 }
   0xc   :  { %p187_p6 = por %p186_p5, %p185_p4 }
   0xe   :  { %p188_p7 = pnand %p187_p6, %p181_p3 }
  0x10   :  { %191 = shalt.err (!%p188_p7)
}
  0x11   :  { %s243_s22 = smov 64   ;;  %s244_s23 = smov 4  }
  0x12   :  { %25 = dma.hbm_to_vmem [thread:$0]  %s317_s1, 128, %s20_s13, [#allocation4], %s243_s22, %s243_s22, %s244_s23  }
  0x13   :  { %s245_s26 = smov [#allocation6]   ;;  %s192_s30 = scalar_lea.hbm %s318_s2, 512 }
  0x14   :  { %s31_s27 = sshll.u32 %s245_s26, 4  ;;  %p193_p8 = scmp.ne.s32.totalorder %s318_s2, %s192_s30  ;;  %s32_s27 = int_to_ptr.vmem [resolvable:$true] %s31_s27 }
  0x15   :  { %p196_p9 = scmp.lt.u32.totalorder %s192_s30, %s318_s2 }
  0x17   :  { %p198_p10 = pnand %p196_p9, %p193_p8 }
  0x19   :  { %201 = shalt.err (!%p198_p10)
}
  0x1a   :  { %s202_s8 = scalar_lea.vmem %s32_s27, 512  ;;  %p207_p12 = scmp.lt.s32.totalorder %s32_s27, %s32_s27 }
  0x1b   :  { %p203_p11 = scmp.ne.s32.totalorder %s32_s27, %s202_s8  ;;  %p208_p13 = scmp.lt.s32.totalorder %s202_s8, %s202_s8 }
  0x1d   :  { %p209_p0 = por %p208_p13, %p207_p12 }
  0x1f   :  { %p210_p1 = pnand %p209_p0, %p203_p11 }
  0x21   :  { %213 = shalt.err (!%p210_p1)
}
  0x22   :  { %s246_s1 = smov 128   ;;  %s247_s9 = smov 8  }
  0x23   :  { %37 = dma.hbm_to_vmem [thread:$0]  %s318_s2, 512, %s32_s27, [#allocation7], %s246_s1, %s246_s1, %s247_s9  }
  0x24   :  { %236 = dma.done.wait [#allocation4], 128  }
  0x25   :  { %237 = vsyncadd [#allocation4], 4294967168 }
  0x26   :  { %238 = dma.done.wait [#allocation7], 512  }
  0x27   :  { %239 = vsyncadd [#allocation7], 4294966784  ;;  %v248_v0 = vmov 0.0   ;;  %vm249_vm0 = vmmov 0   ;;  %v47_v1 = vld [vmem:[#allocation6] sm:$0xff]  ;;  %v48_v4 = vld [vmem:[#allocation6 + $0x8] sm:$0xff]  ;;  %v107_v14 = vstv %s316_s0 }
  0x28   :  { %140 = vmatprep.subr.bf16.mxu0 %v248_v0  ;;  %156 = vmatprep.mubr.msk.bf16.mxu0 %vm249_vm0, %v248_v0  ;;  %v51_v2 = vunpack.c.l.s8.bf16 %v47_v1  ;;  %v52_v3 = vunpack.c.h.s8.bf16 %v47_v1  ;;  %v53_v5 = vunpack.c.l.s8.bf16 %v48_v4  ;;  %v54_v6 = vunpack.c.h.s8.bf16 %v48_v4  ;;  %v49_v7 = vld [vmem:[#allocation6 + $0x10] sm:$0xff]  ;;  %v50_v10 = vld [vmem:[#allocation6 + $0x18] sm:$0xff]  ;;  %s250_s13 = smov [#allocation8]  }
  0x29   :  { %v55_v8 = vunpack.c.l.s8.bf16 %v49_v7  ;;  %v56_v9 = vunpack.c.h.s8.bf16 %v49_v7  ;;  %v57_v11 = vunpack.c.l.s8.bf16 %v50_v10  ;;  %v58_v12 = vunpack.c.h.s8.bf16 %v50_v10  ;;  %v169_v13 = vld [vmem:[#allocation3] sm:$0xff]   ;;  %s117_s14 = sshll.u32 %s250_s13, 4  ;;  %s118_s14 = int_to_ptr.vmem [resolvable:$true] %s117_s14 }
  0x2a   :  { %141 = vmatpush3.bf16.msra.mxu0 %v51_v2  ;;  %s214_s15 = scalar_lea.vmem %s118_s14, 256  ;;  %p219_p3 = scmp.lt.s32.totalorder %s118_s14, %s118_s14 }
  0x2b   :  { %142 = vmatprep.subr.bf16.mxu0 %v248_v0  ;;  %p215_p2 = scmp.ne.s32.totalorder %s118_s14, %s214_s15  ;;  %p220_p4 = scmp.lt.s32.totalorder %s214_s15, %s214_s15 }
  0x2d   :  { %p221_p5 = por %p220_p4, %p219_p3 }
  0x2e   :  { %143 = vmatpush3.bf16.msra.mxu0 %v52_v3 }
  0x2f   :  { %144 = vmatprep.subr.bf16.mxu0 %v248_v0  ;;  %p222_p6 = pnand %p221_p5, %p215_p2 }
  0x32   :  { %145 = vmatpush3.bf16.msra.mxu0 %v53_v5 }
  0x33   :  { %146 = vmatprep.subr.bf16.mxu0 %v248_v0 }
  0x36   :  { %147 = vmatpush3.bf16.msra.mxu0 %v54_v6 }
  0x37   :  { %148 = vmatprep.subr.bf16.mxu0 %v248_v0 }
  0x3a   :  { %149 = vmatpush3.bf16.msra.mxu0 %v55_v8 }
  0x3b   :  { %150 = vmatprep.subr.bf16.mxu0 %v248_v0 }
  0x3e   :  { %151 = vmatpush3.bf16.msra.mxu0 %v56_v9 }
  0x3f   :  { %152 = vmatprep.subr.bf16.mxu0 %v248_v0 }
  0x42   :  { %153 = vmatpush3.bf16.msra.mxu0 %v57_v11 }
  0x43   :  { %154 = vmatprep.subr.bf16.mxu0 %v248_v0 }
  0x46   :  { %155 = vmatpush3.bf16.msra.mxu0 %v58_v12 }
  0x49   :  { %157 = vmatmul.mubr.bf16.vlgmr.msra.gmra.mrb[0].mxu0 %v169_v13 }
 0x11c   :  { %v99_v15 = vpop.f32.mrb[0].mxu0 }
 0x11d   :  { %v108_v16 = vmul.f32 %v107_v14, %v99_v15  ;;  %v158_v17 = vpop.f32.mrb[1].mxu0 }
 0x11e   :  { %v102_v18 = vpop.f32.mrb[2].mxu0 }
 0x11f   :  { %110 = vst [vmem:[#allocation8] sm:$0xff] %v108_v16  ;;  %v109_v19 = vmul.f32 %v107_v14, %v102_v18  ;;  %v159_v20 = vpop.f32.mrb[3].mxu0 }
 0x121   :  { %111 = vst [vmem:[#allocation8 + $0x8] sm:$0xff] %v109_v19 }
 0x122   :  { %225 = shalt.err (!%p222_p6)
}
 0x123   :  { %s226_s17 = scalar_lea.hbm %s319_s3, 256 }
 0x124   :  { %p227_p7 = scmp.ne.s32.totalorder %s319_s3, %s226_s17  ;;  %p230_p8 = scmp.lt.u32.totalorder %s226_s17, %s319_s3 }
 0x126   :  { %p232_p9 = pnand %p230_p8, %p227_p7 }
 0x128   :  { %235 = shalt.err (!%p232_p9)
}
 0x129   :  { %123 = dma.vmem_to_hbm [thread:$0]  %s118_s14, 256, %s319_s3, [#allocation5], %s246_s1, %s246_s1, %s247_s9  }
 0x12a   :  { %240 = dma.done.wait [#allocation5], 256  }
 0x12b   :  { %241 = vsyncadd [#allocation5], 4294967040 }
 0x12c   :  { %127 = vsyncpa [#allocation4], 1 }
 0x12d   :  { %128 = vsyncpa [#allocation7], 1 }
 0x12e   :  { %129 = vsyncpa [#allocation5], 1 }

</bundles_post_ra>
